<compile_context>
chip_gen: v7x
topology: tpu7x:2x2x1
jax: 0.10.0
libtpu: 0.0.40
codegen_flags: <defaults>
</compile_context>

<pallas_src>
import functools

import jax
import jax.numpy as jnp
from jax.experimental import pallas as pl
from jax.experimental.pallas import tpu as pltpu

_NEG_BIG = -1e30          # "minus infinity" that stays NaN-free through 0 * x and max()
_DIST_EPS = 1e-7          # torch.clamp(dist, 1e-07, inf)
_NORM_EPS = 1e-5          # torch.clamp(norm^2, min=1e-05)


def _ceil_to(x, m):
    return ((x + m - 1) // m) * m


def _vmem_limit_bytes():
    """Generation-aware VMEM request: ~3/4 of physical capacity, capped at 100 MiB
    (v5e/v6e have 128 MiB, v7x only 64 -> ~48 MiB there); safe default if query fails."""
    try:
        cap = getattr(pltpu.get_tpu_info(), "vmem_capacity_bytes", None)
        if cap:
            return int(min(cap * 3 // 4, 100 * 1024 * 1024))
    except Exception:
        pass
    return 48 * 1024 * 1024


def _choose_tiles(n, d):
    """Returns (tile_m, tile_k, n_pad): anchor tile, contrast tile, padded problem size."""
    n8 = _ceil_to(max(n, 8), 8)
    if n8 <= 256:
        return n8, n8, n8                       # single block; full-dim blocks satisfy layout rules
    tm, tk = 256, 512                           # lane/MXU friendly; >=2 anchor tiles for megacore

    def live_bytes(tm_, tk_):
        # 2x double-buffered feature blocks + ~8 [tk, tm] f32 temporaries (incl. mask strip).
        return 4 * (2 * d * tm_ + 2 * tk_ * d + 8 * tk_ * tm_)

    budget = 40 * 1024 * 1024                   # conservative so v7x's 64 MiB keeps headroom
    while live_bytes(tm, tk) > budget and tk > 128:
        tk //= 2
    while live_bytes(tm, tk) > budget and tm > 128:
        tm //= 2
    # TODO(synk): chunk the feature (D) axis as well if the feature blocks alone exceed VMEM.
    step = max(tm, tk)
    return tm, tk, _ceil_to(n8, step)


def _pair_logits(xt_blk, y_blk, sqn_row, sqn_col, c_row, c_col, neg_inv_temp):
    """-poincare_distance^2 / T for one [TILE_K, TILE_M] (contrast, anchor) block."""
    gram = jnp.dot(y_blk, xt_blk, preferred_element_type=jnp.float32)      # MXU, NN layout
    dist = jnp.maximum((sqn_col - 2.0 * gram) + sqn_row, _DIST_EPS)
    zm1 = dist * c_col * c_row              # z - 1 = 2*dist/(a_i*a_j); the 2 is folded into c_col
    # acosh(z) = log(z + sqrt((z-1)(z+1))): cancellation-free for small z-1
    poinc = jnp.log((1.0 + zm1) + jnp.sqrt(zm1 * (zm1 + 2.0)))
    return (poinc * poinc) * neg_inv_temp


def _accumulate(adc_stat, pos_term, m_acc, e_acc, pl_acc):
    """Online (flash-style) update of the per-anchor running max / exp-sum / pos-logit sum."""
    m_prev = m_acc[...]
    m_new = jnp.maximum(m_prev, jnp.max(adc_stat, axis=0, keepdims=True))
    e_acc[...] = (e_acc[...] * jnp.exp(m_prev - m_new)
                  + jnp.sum(jnp.exp(adc_stat - m_new), axis=0, keepdims=True))
    pl_acc[...] = pl_acc[...] + jnp.sum(pos_term, axis=0, keepdims=True)
    m_acc[...] = m_new


def _finalize(out_ref, cnt_ref, m_acc, e_acc, pl_acc, loss_scale):
    cnt = cnt_ref[...]                                      # positives per anchor, excluding self
    lse = m_acc[...] + jnp.log(e_acc[...])                  # log sum_{n != m} exp(adc[n, m])
    # fused mean_log_prob_pos = (sum(pos*adc) - cnt*lse) / cnt; NaN when cnt == 0 (as in torch)
    out_ref[...] = loss_scale * (pl_acc[...] - cnt * lse) / cnt


def _supcon_ids_kernel(xt_ref, y_ref, sqnr_ref, sqnc_ref, cr_ref, cc_ref,
                       idr_ref, idc_ref, cnt_ref, out_ref,
                       m_acc, e_acc, pl_acc, *,
                       tile_m, tile_k, n_valid, has_tail, neg_inv_temp, loss_scale):
    """labels / SimCLR path: positives built in-kernel from int32 ids (no N^2 mask over HBM)."""
    i = pl.program_id(0)
    k = pl.program_id(1)

    @pl.when(k == 0)
    def _init():
        m_acc[...] = jnp.full_like(m_acc, _NEG_BIG)
        e_acc[...] = jnp.zeros_like(e_acc)
        pl_acc[...] = jnp.zeros_like(pl_acc)

    adc = _pair_logits(xt_ref[...], y_ref[...], sqnr_ref[...], sqnc_ref[...],
                       cr_ref[...], cc_ref[...], neg_inv_temp)
    match = idc_ref[...] == idr_ref[...]                    # [TILE_K, 1] == [1, TILE_M]

    diag_here = jnp.logical_and(i * tile_m < (k + 1) * tile_k,
                                k * tile_k < (i + 1) * tile_m)
    if has_tail:
        needs_mask = jnp.logical_or(diag_here, (k + 1) * tile_k > n_valid)
    else:
        needs_mask = diag_here

    @pl.when(needs_mask)                                    # rare blocks: diagonal and/or tail
    def _masked():
        cidx = k * tile_k + jax.lax.broadcasted_iota(jnp.int32, adc.shape, 0)
        aidx = i * tile_m + jax.lax.broadcasted_iota(jnp.int32, adc.shape, 1)
        invalid = cidx == aidx
        if has_tail:
            invalid = jnp.logical_or(invalid, cidx >= n_valid)
        adc_stat = jnp.where(invalid, _NEG_BIG, adc)
        keep = jnp.logical_and(match, jnp.logical_not(invalid))
        _accumulate(adc_stat, jnp.where(keep, adc, 0.0), m_acc, e_acc, pl_acc)

    @pl.when(jnp.logical_not(needs_mask))                   # common blocks: no masking passes
    def _plain():
        _accumulate(adc, jnp.where(match, adc, 0.0), m_acc, e_acc, pl_acc)

    @pl.when(k == pl.num_programs(1) - 1)
    def _fin():
        _finalize(out_ref, cnt_ref, m_acc, e_acc, pl_acc, loss_scale)


def _supcon_mask_kernel(xt_ref, y_ref, sqnr_ref, sqnc_ref, cr_ref, cc_ref,
                        mask_ref, cnt_ref, out_ref,
                        m_acc, e_acc, pl_acc, *,
                        tile_m, tile_k, n_valid, has_tail, neg_inv_temp, loss_scale):
    """explicit (possibly asymmetric) mask path: [contrast, anchor] mask strips streamed."""
    i = pl.program_id(0)
    k = pl.program_id(1)

    @pl.when(k == 0)
    def _init():
        m_acc[...] = jnp.full_like(m_acc, _NEG_BIG)
        e_acc[...] = jnp.zeros_like(e_acc)
        pl_acc[...] = jnp.zeros_like(pl_acc)

    adc = _pair_logits(xt_ref[...], y_ref[...], sqnr_ref[...], sqnc_ref[...],
                       cr_ref[...], cc_ref[...], neg_inv_temp)
    pos_w = mask_ref[...]

    diag_here = jnp.logical_and(i * tile_m < (k + 1) * tile_k,
                                k * tile_k < (i + 1) * tile_m)
    if has_tail:
        needs_mask = jnp.logical_or(diag_here, (k + 1) * tile_k > n_valid)
    else:
        needs_mask = diag_here

    @pl.when(needs_mask)
    def _masked():
        cidx = k * tile_k + jax.lax.broadcasted_iota(jnp.int32, adc.shape, 0)
        aidx = i * tile_m + jax.lax.broadcasted_iota(jnp.int32, adc.shape, 1)
        invalid = cidx == aidx
        if has_tail:
            invalid = jnp.logical_or(invalid, cidx >= n_valid)
        adc_stat = jnp.where(invalid, _NEG_BIG, adc)
        pos_term = jnp.where(invalid, 0.0, pos_w * adc)
        _accumulate(adc_stat, pos_term, m_acc, e_acc, pl_acc)

    @pl.when(jnp.logical_not(needs_mask))
    def _plain():
        _accumulate(adc, pos_w * adc, m_acc, e_acc, pl_acc)

    @pl.when(k == pl.num_programs(1) - 1)
    def _fin():
        _finalize(out_ref, cnt_ref, m_acc, e_acc, pl_acc, loss_scale)


def supcon_loss(features, labels=None, mask=None, *,
                temperature=0.1, contrast_mode="all", base_temperature=0.1):
    """JAX/Pallas equivalent of SupConLoss.forward (contrast_mode='all')."""
    if features.ndim < 3:
        raise ValueError("`features` needs to be [bsz, n_views, ...]")
    if labels is not None and mask is not None:
        raise ValueError("Cannot define both `labels` and `mask`")
    if contrast_mode != "all":
        # TODO(synk): contrast_mode='one' (rectangular anchor x contrast grid) not implemented.
        raise NotImplementedError("only contrast_mode='all' is implemented")

    bsz, n_views = features.shape[0], features.shape[1]
    feats = features.reshape(bsz, n_views, -1).astype(jnp.float32)
    d = feats.shape[-1]
    n = bsz * n_views

    # contrast_feature = torch.cat(torch.unbind(features, 1), 0): row v*bsz + b = feats[b, v]
    cf = jnp.transpose(feats, (1, 0, 2)).reshape(n, d)

    tile_m, tile_k, n_pad = _choose_tiles(n, d)
    pad = n_pad - n
    has_tail = pad > 0
    num_i = n_pad // tile_m
    num_k = n_pad // tile_k

    cf_p = jnp.pad(cf, ((0, pad), (0, 0))) if pad else cf
    cf_t = cf_p.T                                          # [D, N_pad]: MXU-native anchor operand

    # Hoisted rank-1 quantities: squared norms + Poincare reciprocals (no per-pair divisions).
    sqn = jnp.sum(cf_p * cf_p, axis=-1)                    # [N_pad]
    inv_a = 1.0 / (1.0 - jnp.maximum(sqn, _NORM_EPS))
    sqn_row = sqn.reshape(1, n_pad)
    sqn_col = sqn.reshape(n_pad, 1)
    c_row = inv_a.reshape(1, n_pad)
    c_col = (2.0 * inv_a).reshape(n_pad, 1)

    neg_inv_temp = -1.0 / float(temperature)
    loss_scale = -(float(temperature) / float(base_temperature))

    xt_spec = pl.BlockSpec((d, tile_m), lambda i, k: (0, i))
    y_spec = pl.BlockSpec((tile_k, d), lambda i, k: (k, 0))
    row_spec = pl.BlockSpec((1, tile_m), lambda i, k: (0, i))
    col_spec = pl.BlockSpec((tile_k, 1), lambda i, k: (k, 0))
    out_spec = pl.BlockSpec((1, tile_m), lambda i, k: (0, i))
    scratch = [pltpu.VMEM((1, tile_m), jnp.float32) for _ in range(3)]

    cparams = pltpu.CompilerParams(
        dimension_semantics=("parallel", "arbitrary"),
        vmem_limit_bytes=_vmem_limit_bytes(),
    )
    common = dict(tile_m=tile_m, tile_k=tile_k, n_valid=n, has_tail=has_tail,
                  neg_inv_temp=neg_inv_temp, loss_scale=loss_scale)
    feat_bytes = 4 * n_pad * d * (num_i + 1)               # y streamed once per anchor tile + x_t

    if mask is None:
        if labels is None:
            ids = jnp.arange(bsz, dtype=jnp.int32)          # SimCLR: eye(bsz) positives
        else:
            labels = jnp.asarray(labels).reshape(-1)
            if labels.shape[0] != bsz:
                raise ValueError("Num of labels does not match num of features")
            ids = labels.astype(jnp.int32)
        ids_full = jnp.tile(ids, n_views)                   # view-major row order
        # exact per-anchor positive count (excluding self), hoisted out of the kernel
        cnt_b = jnp.sum(ids[None, :] == ids[:, None], axis=1)
        pos_cnt = (n_views * jnp.tile(cnt_b, n_views) - 1).astype(jnp.float32)
        ids_p = jnp.pad(ids_full, (0, pad)) if pad else ids_full
        cnt_p = jnp.pad(pos_cnt, (0, pad), constant_values=1.0) if pad else pos_cnt

        kernel = functools.partial(_supcon_ids_kernel, **common)
        cost = pl.CostEstimate(flops=int(2 * n_pad * n_pad * d + 16 * n_pad * n_pad),
                               transcendentals=int(3 * n_pad * n_pad),
                               bytes_accessed=int(feat_bytes + 4 * 8 * n_pad))
        per_anchor = pl.pallas_call(
            kernel,
            out_shape=jax.ShapeDtypeStruct((1, n_pad), jnp.float32),
            grid=(num_i, num_k),
            in_specs=[xt_spec, y_spec, row_spec, col_spec, row_spec, col_spec,
                      row_spec, col_spec, row_spec],
            out_specs=out_spec,
            scratch_shapes=scratch,
            compiler_params=cparams,
            cost_estimate=cost,
        )(cf_t, cf_p, sqn_row, sqn_col, c_row, c_col,
          ids_p.reshape(1, n_pad), ids_p.reshape(n_pad, 1), cnt_p.reshape(1, n_pad))
    else:
        base = jnp.asarray(mask, dtype=jnp.float32)
        # [contrast, anchor]-oriented full mask; streamed as (TILE_K, TILE_M) strips.
        mask_t = jnp.tile(base, (n_views, n_views)).T
        if pad:
            mask_t = jnp.pad(mask_t, ((0, pad), (0, pad)))
        # per-anchor positive weight (excluding self), hoisted out of the kernel
        pos_cnt = jnp.tile(n_views * jnp.sum(base, axis=1) - jnp.diag(base), n_views)
        cnt_p = jnp.pad(pos_cnt, (0, pad), constant_values=1.0) if pad else pos_cnt

        mask_spec = pl.BlockSpec((tile_k, tile_m), lambda i, k: (k, i))
        kernel = functools.partial(_supcon_mask_kernel, **common)
        cost = pl.CostEstimate(flops=int(2 * n_pad * n_pad * d + 17 * n_pad * n_pad),
                               transcendentals=int(3 * n_pad * n_pad),
                               bytes_accessed=int(feat_bytes + 4 * n_pad * n_pad + 4 * 6 * n_pad))
        per_anchor = pl.pallas_call(
            kernel,
            out_shape=jax.ShapeDtypeStruct((1, n_pad), jnp.float32),
            grid=(num_i, num_k),
            in_specs=[xt_spec, y_spec, row_spec, col_spec, row_spec, col_spec,
                      mask_spec, row_spec],
            out_specs=out_spec,
            scratch_shapes=scratch,
            compiler_params=cparams,
            cost_estimate=cost,
        )(cf_t, cf_p, sqn_row, sqn_col, c_row, c_col, mask_t, cnt_p.reshape(1, n_pad))

    # loss.view(anchor_count, batch_size).mean() == mean over all N per-anchor losses
    return jnp.mean(per_anchor[0, :n])


def _supcon_ref(features, labels=None, mask=None, *, temperature=0.1, base_temperature=0.1):
    """Pure-JAX reference mirroring the PyTorch code (contrast_mode='all')."""
    bsz, n_views = features.shape[0], features.shape[1]
    feats = features.reshape(bsz, n_views, -1).astype(jnp.float32)
    cf = jnp.transpose(feats, (1, 0, 2)).reshape(bsz * n_views, -1)
    n = bsz * n_views
    if mask is None:
        if labels is None:
            base = jnp.eye(bsz, dtype=jnp.float32)
        else:
            l = jnp.asarray(labels).reshape(-1, 1)
            base = (l == l.T).astype(jnp.float32)
    else:
        base = jnp.asarray(mask, dtype=jnp.float32)
    xn = jnp.sum(cf ** 2, axis=1, keepdims=True)
    dist = jnp.clip(xn + xn.T - 2.0 * cf @ cf.T, 1e-7, jnp.inf)
    a = 1.0 - jnp.maximum(xn, 1e-5)
    poinc = jnp.arccosh(1.0 + 2.0 * dist / (a @ a.T))
    adc = -(poinc ** 2) / temperature
    logits = adc - jnp.max(adc, axis=1, keepdims=True)
    full_mask = jnp.tile(base, (n_views, n_views))
    lm = 1.0 - jnp.eye(n, dtype=jnp.float32)
    pm = full_mask * lm
    exp_logits = jnp.exp(logits) * lm
    log_prob = logits - jnp.log(jnp.sum(exp_logits, axis=1, keepdims=True))
    mlpp = jnp.sum(pm * log_prob, axis=1) / jnp.sum(pm, axis=1)
    return jnp.mean(-(temperature / base_temperature) * mlpp)


if __name__ == "__main__":
    key = jax.random.PRNGKey(0)
    k1, k2, k3, k4 = jax.random.split(key, 4)

    # ---- small case: all three paths, single-block kernel --------------------------------
    bsz, n_views, d = 4, 2, 32
    feats = jax.random.normal(k1, (bsz, n_views, d), dtype=jnp.float32)
    feats = 0.5 * feats / jnp.linalg.norm(feats, axis=-1, keepdims=True)    # inside unit ball
    labels = jax.random.randint(k2, (bsz,), 0, 2)

    loss_sup = supcon_loss(feats, labels=labels, temperature=0.1, base_temperature=0.1)
    loss_simclr = supcon_loss(feats, temperature=0.1, base_temperature=0.1)
    eq_mask = (labels[:, None] == labels[None, :]).astype(jnp.float32)
    loss_mask = supcon_loss(feats, mask=eq_mask, temperature=0.1, base_temperature=0.1)
    jax.block_until_ready((loss_sup, loss_simclr, loss_mask))

    ref_sup = _supcon_ref(feats, labels=labels)
    ref_simclr = _supcon_ref(feats)
    assert loss_sup.shape == () and bool(jnp.isfinite(loss_sup))
    assert bool(jnp.allclose(loss_sup, ref_sup, rtol=1e-4, atol=1e-5)), (loss_sup, ref_sup)
    assert bool(jnp.allclose(loss_simclr, ref_simclr, rtol=1e-4, atol=1e-5)), (loss_simclr, ref_simclr)
    assert bool(jnp.allclose(loss_mask, loss_sup, rtol=1e-4, atol=1e-5)), (loss_mask, loss_sup)

    # ---- medium case: exercises multi-tile grid, online accumulators, padded-tail masking --
    bszm, n_viewsm, dm = 300, 2, 32
    featsm = jax.random.normal(k3, (bszm, n_viewsm, dm), dtype=jnp.float32)
    featsm = 0.5 * featsm / jnp.linalg.norm(featsm, axis=-1, keepdims=True)
    labelsm = jax.random.randint(k4, (bszm,), 0, 10)

    loss_m = supcon_loss(featsm, labels=labelsm, temperature=0.1, base_temperature=0.1)
    jax.block_until_ready(loss_m)
    ref_m = _supcon_ref(featsm, labels=labelsm)
    assert bool(jnp.isfinite(loss_m))
    assert bool(jnp.allclose(loss_m, ref_m, rtol=2e-3, atol=2e-3)), (loss_m, ref_m)

    print("KERNEL_OK")
</pallas_src>

<mosaic_0001>
module attributes {stable_mosaic.version = 11 : i64} {
  func.func @_supcon_ids_kernel(%arg0: i32, %arg1: i32, %arg2: memref<32x8xf32, #tpu.memory_space<vmem>>, %arg3: memref<8x32xf32, #tpu.memory_space<vmem>>, %arg4: memref<1x8xf32, #tpu.memory_space<vmem>>, %arg5: memref<8x1xf32, #tpu.memory_space<vmem>>, %arg6: memref<1x8xf32, #tpu.memory_space<vmem>>, %arg7: memref<8x1xf32, #tpu.memory_space<vmem>>, %arg8: memref<1x8xi32, #tpu.memory_space<vmem>>, %arg9: memref<8x1xi32, #tpu.memory_space<vmem>>, %arg10: memref<1x8xf32, #tpu.memory_space<vmem>>, %arg11: memref<1x8xf32, #tpu.memory_space<vmem>>, %arg12: memref<1x8xf32, #tpu.memory_space<vmem>>, %arg13: memref<1x8xf32, #tpu.memory_space<vmem>>, %arg14: memref<1x8xf32, #tpu.memory_space<vmem>>) attributes {dimension_semantics = [#tpu.dimension_semantics<parallel>, #tpu.dimension_semantics<arbitrary>], iteration_bounds = array<i64: 1, 1>, scalar_prefetch = 0 : i64, scratch_operands = 3 : i64, tpu.core_type = #tpu.core_type<tc>, window_params = [{transform_indices = @transform_0, window_bounds = array<i64: 32, 8>}, {transform_indices = @transform_1, window_bounds = array<i64: 8, 32>}, {transform_indices = @transform_2, window_bounds = array<i64: 1, 8>}, {transform_indices = @transform_3, window_bounds = array<i64: 8, 1>}, {transform_indices = @transform_4, window_bounds = array<i64: 1, 8>}, {transform_indices = @transform_5, window_bounds = array<i64: 8, 1>}, {transform_indices = @transform_6, window_bounds = array<i64: 1, 8>}, {transform_indices = @transform_7, window_bounds = array<i64: 8, 1>}, {transform_indices = @transform_8, window_bounds = array<i64: 1, 8>}, {transform_indices = @transform_9, window_bounds = array<i64: 1, 8>}]} {
    %c0_i32 = arith.constant 0 : i32
    %0 = arith.cmpi eq, %arg1, %c0_i32 : i32
    %1 = arith.extui %0 : i1 to i32
    %c0_i32_0 = arith.constant 0 : i32
    %2 = arith.cmpi ne, %1, %c0_i32_0 : i32
    scf.if %2 {
      %cst_29 = arith.constant -1.000000e+30 : f32
      %55 = vector.broadcast %cst_29 : f32 to vector<1x8xf32>
      %c0_30 = arith.constant 0 : index
      %c0_31 = arith.constant 0 : index
      %56 = vector.load %arg12[%c0_30, %c0_31] : memref<1x8xf32, #tpu.memory_space<vmem>>, vector<1x8xf32>
      tpu.vector_store %arg12[%c0_30, %c0_31], %55 {strides = array<i32>} : memref<1x8xf32, #tpu.memory_space<vmem>>, vector<1x8xf32>,
      %cst_32 = arith.constant 0.000000e+00 : f32
      %57 = vector.broadcast %cst_32 : f32 to vector<1x8xf32>
      %c0_33 = arith.constant 0 : index
      %c0_34 = arith.constant 0 : index
      %58 = vector.load %arg13[%c0_33, %c0_34] : memref<1x8xf32, #tpu.memory_space<vmem>>, vector<1x8xf32>
      tpu.vector_store %arg13[%c0_33, %c0_34], %57 {strides = array<i32>} : memref<1x8xf32, #tpu.memory_space<vmem>>, vector<1x8xf32>,
      %cst_35 = arith.constant 0.000000e+00 : f32
      %59 = vector.broadcast %cst_35 : f32 to vector<1x8xf32>
      %c0_36 = arith.constant 0 : index
      %c0_37 = arith.constant 0 : index
      %60 = vector.load %arg14[%c0_36, %c0_37] : memref<1x8xf32, #tpu.memory_space<vmem>>, vector<1x8xf32>
      tpu.vector_store %arg14[%c0_36, %c0_37], %59 {strides = array<i32>} : memref<1x8xf32, #tpu.memory_space<vmem>>, vector<1x8xf32>,
    } else {
    }
    %c0 = arith.constant 0 : index
    %c0_1 = arith.constant 0 : index
    %3 = vector.load %arg2[%c0, %c0_1] : memref<32x8xf32, #tpu.memory_space<vmem>>, vector<32x8xf32>
    %c0_2 = arith.constant 0 : index
    %c0_3 = arith.constant 0 : index
    %4 = vector.load %arg3[%c0_2, %c0_3] : memref<8x32xf32, #tpu.memory_space<vmem>>, vector<8x32xf32>
    %c0_4 = arith.constant 0 : index
    %c0_5 = arith.constant 0 : index
    %5 = vector.load %arg4[%c0_4, %c0_5] : memref<1x8xf32, #tpu.memory_space<vmem>>, vector<1x8xf32>
    %c0_6 = arith.constant 0 : index
    %c0_7 = arith.constant 0 : index
    %6 = vector.load %arg5[%c0_6, %c0_7] : memref<8x1xf32, #tpu.memory_space<vmem>>, vector<8x1xf32>
    %c0_8 = arith.constant 0 : index
    %c0_9 = arith.constant 0 : index
    %7 = vector.load %arg6[%c0_8, %c0_9] : memref<1x8xf32, #tpu.memory_space<vmem>>, vector<1x8xf32>
    %c0_10 = arith.constant 0 : index
    %c0_11 = arith.constant 0 : index
    %8 = vector.load %arg7[%c0_10, %c0_11] : memref<8x1xf32, #tpu.memory_space<vmem>>, vector<8x1xf32>
    %cst = arith.constant dense<0.000000e+00> : vector<8x8xf32>
    %9 = tpu.matmul %4, %3, %cst {dimension_numbers = #tpu.dot_dimension_numbers<[1], [0], [0], [1], [0, 0, 1, 1], [], []>} : vector<8x32xf32>, vector<32x8xf32>, vector<8x8xf32> -> vector<8x8xf32>
    %cst_12 = arith.constant 2.000000e+00 : f32
    %10 = vector.broadcast %cst_12 : f32 to vector<8x8xf32>
    %11 = arith.mulf %10, %9 : vector<8x8xf32>
    %12 = vector.broadcast %6 : vector<8x1xf32> to vector<8x8xf32>
    %13 = arith.subf %12, %11 : vector<8x8xf32>
    %14 = vector.broadcast %5 : vector<1x8xf32> to vector<8x8xf32>
    %15 = arith.addf %13, %14 : vector<8x8xf32>
    %cst_13 = arith.constant 1.000000e-07 : f32
    %16 = vector.broadcast %cst_13 : f32 to vector<8x8xf32>
    %17 = arith.maximumf %15, %16 : vector<8x8xf32>
    %18 = vector.broadcast %8 : vector<8x1xf32> to vector<8x8xf32>
    %19 = arith.mulf %17, %18 : vector<8x8xf32>
    %20 = vector.broadcast %7 : vector<1x8xf32> to vector<8x8xf32>
    %21 = arith.mulf %19, %20 : vector<8x8xf32>
    %cst_14 = arith.constant 1.000000e+00 : f32
    %22 = vector.broadcast %cst_14 : f32 to vector<8x8xf32>
    %23 = arith.addf %22, %21 : vector<8x8xf32>
    %cst_15 = arith.constant 2.000000e+00 : f32
    %24 = vector.broadcast %cst_15 : f32 to vector<8x8xf32>
    %25 = arith.addf %21, %24 : vector<8x8xf32>
    %26 = arith.mulf %21, %25 : vector<8x8xf32>
    %27 = math.sqrt %26 : vector<8x8xf32>
    %28 = arith.addf %23, %27 : vector<8x8xf32>
    %29 = math.log %28 : vector<8x8xf32>
    %30 = arith.mulf %29, %29 : vector<8x8xf32>
    %cst_16 = arith.constant -1.000000e+01 : f32
    %31 = vector.broadcast %cst_16 : f32 to vector<8x8xf32>
    %32 = arith.mulf %30, %31 : vector<8x8xf32>
    %c0_17 = arith.constant 0 : index
    %c0_18 = arith.constant 0 : index
    %33 = vector.load %arg9[%c0_17, %c0_18] : memref<8x1xi32, #tpu.memory_space<vmem>>, vector<8x1xi32>
    %c0_19 = arith.constant 0 : index
    %c0_20 = arith.constant 0 : index
    %34 = vector.load %arg8[%c0_19, %c0_20] : memref<1x8xi32, #tpu.memory_space<vmem>>, vector<1x8xi32>
    %35 = vector.broadcast %33 : vector<8x1xi32> to vector<8x8xi32>
    %36 = vector.broadcast %34 : vector<1x8xi32> to vector<8x8xi32>
    %37 = arith.cmpi eq, %35, %36 : vector<8x8xi32>
    %c8_i32 = arith.constant 8 : i32
    %38 = arith.muli %arg0, %c8_i32 : i32
    %c1_i32 = arith.constant 1 : i32
    %39 = arith.addi %arg1, %c1_i32 : i32
    %c8_i32_21 = arith.constant 8 : i32
    %40 = arith.muli %39, %c8_i32_21 : i32
    %41 = arith.cmpi slt, %38, %40 : i32
    %c8_i32_22 = arith.constant 8 : i32
    %42 = arith.muli %arg1, %c8_i32_22 : i32
    %c1_i32_23 = arith.constant 1 : i32
    %43 = arith.addi %arg0, %c1_i32_23 : i32
    %c8_i32_24 = arith.constant 8 : i32
    %44 = arith.muli %43, %c8_i32_24 : i32
    %45 = arith.cmpi slt, %42, %44 : i32
    %46 = arith.andi %41, %45 : i1
    %47 = arith.extui %46 : i1 to i32
    %c0_i32_25 = arith.constant 0 : i32
    %48 = arith.cmpi ne, %47, %c0_i32_25 : i32
    scf.if %48 {
      %c8_i32_29 = arith.constant 8 : i32
      %55 = arith.muli %arg1, %c8_i32_29 : i32
      %56 = tpu.iota {dimensions = array<i32: 0>} : vector<8x8xi32>
      %57 = vector.broadcast %55 : i32 to vector<8x8xi32>
      %58 = arith.addi %57, %56 : vector<8x8xi32>
      %c8_i32_30 = arith.constant 8 : i32
      %59 = arith.muli %arg0, %c8_i32_30 : i32
      %60 = tpu.iota {dimensions = array<i32: 1>} : vector<8x8xi32>
      %61 = vector.broadcast %59 : i32 to vector<8x8xi32>
      %62 = arith.addi %61, %60 : vector<8x8xi32>
      %63 = arith.cmpi eq, %58, %62 : vector<8x8xi32>
      %cst_31 = arith.constant -1.000000e+30 : f32
      %64 = vector.broadcast %cst_31 : f32 to vector<8x8xf32>
      %65 = arith.select %63, %64, %32 : vector<8x8xi1>, vector<8x8xf32>
      %cst_32 = arith.constant dense<true> : vector<8x8xi1>
      %66 = arith.xori %63, %cst_32 : vector<8x8xi1>
      %67 = arith.andi %37, %66 : vector<8x8xi1>
      %cst_33 = arith.constant 0.000000e+00 : f32
      %68 = vector.broadcast %cst_33 : f32 to vector<8x8xf32>
      %69 = arith.select %67, %32, %68 : vector<8x8xi1>, vector<8x8xf32>
      %c0_34 = arith.constant 0 : index
      %c0_35 = arith.constant 0 : index
      %70 = vector.load %arg12[%c0_34, %c0_35] : memref<1x8xf32, #tpu.memory_space<vmem>>, vector<1x8xf32>
      %cst_36 = arith.constant dense<0xFF800000> : vector<8xf32>
      %71 = vector.multi_reduction <maximumf>, %65, %cst_36 [0] : vector<8x8xf32> to vector<8xf32>
      %72 = vector.shape_cast %71 : vector<8xf32> to vector<1x8xf32>
      %73 = arith.maximumf %70, %72 : vector<1x8xf32>
      %c0_37 = arith.constant 0 : index
      %c0_38 = arith.constant 0 : index
      %74 = vector.load %arg13[%c0_37, %c0_38] : memref<1x8xf32, #tpu.memory_space<vmem>>, vector<1x8xf32>
      %75 = arith.subf %70, %73 : vector<1x8xf32>
      %76 = math.exp %75 : vector<1x8xf32>
      %77 = arith.mulf %74, %76 : vector<1x8xf32>
      %78 = vector.broadcast %73 : vector<1x8xf32> to vector<8x8xf32>
      %79 = arith.subf %65, %78 : vector<8x8xf32>
      %80 = math.exp %79 : vector<8x8xf32>
      %cst_39 = arith.constant dense<0.000000e+00> : vector<8xf32>
      %81 = vector.multi_reduction <add>, %80, %cst_39 [0] : vector<8x8xf32> to vector<8xf32>
      %82 = vector.shape_cast %81 : vector<8xf32> to vector<1x8xf32>
      %83 = arith.addf %77, %82 : vector<1x8xf32>
      %c0_40 = arith.constant 0 : index
      %c0_41 = arith.constant 0 : index
      %84 = vector.load %arg13[%c0_40, %c0_41] : memref<1x8xf32, #tpu.memory_space<vmem>>, vector<1x8xf32>
      tpu.vector_store %arg13[%c0_40, %c0_41], %83 {strides = array<i32>} : memref<1x8xf32, #tpu.memory_space<vmem>>, vector<1x8xf32>,
      %c0_42 = arith.constant 0 : index
      %c0_43 = arith.constant 0 : index
      %85 = vector.load %arg14[%c0_42, %c0_43] : memref<1x8xf32, #tpu.memory_space<vmem>>, vector<1x8xf32>
      %cst_44 = arith.constant dense<0.000000e+00> : vector<8xf32>
      %86 = vector.multi_reduction <add>, %69, %cst_44 [0] : vector<8x8xf32> to vector<8xf32>
      %87 = vector.shape_cast %86 : vector<8xf32> to vector<1x8xf32>
      %88 = arith.addf %85, %87 : vector<1x8xf32>
      %c0_45 = arith.constant 0 : index
      %c0_46 = arith.constant 0 : index
      %89 = vector.load %arg14[%c0_45, %c0_46] : memref<1x8xf32, #tpu.memory_space<vmem>>, vector<1x8xf32>
      tpu.vector_store %arg14[%c0_45, %c0_46], %88 {strides = array<i32>} : memref<1x8xf32, #tpu.memory_space<vmem>>, vector<1x8xf32>,
      %c0_47 = arith.constant 0 : index
      %c0_48 = arith.constant 0 : index
      %90 = vector.load %arg12[%c0_47, %c0_48] : memref<1x8xf32, #tpu.memory_space<vmem>>, vector<1x8xf32>
      tpu.vector_store %arg12[%c0_47, %c0_48], %73 {strides = array<i32>} : memref<1x8xf32, #tpu.memory_space<vmem>>, vector<1x8xf32>,
    } else {
    }
    %true = arith.constant true
    %49 = arith.xori %46, %true : i1
    %50 = arith.extui %49 : i1 to i32
    %c0_i32_26 = arith.constant 0 : i32
    %51 = arith.cmpi ne, %50, %c0_i32_26 : i32
    scf.if %51 {
      %cst_29 = arith.constant 0.000000e+00 : f32
      %55 = vector.broadcast %cst_29 : f32 to vector<8x8xf32>
      %56 = arith.select %37, %32, %55 : vector<8x8xi1>, vector<8x8xf32>
      %c0_30 = arith.constant 0 : index
      %c0_31 = arith.constant 0 : index
      %57 = vector.load %arg12[%c0_30, %c0_31] : memref<1x8xf32, #tpu.memory_space<vmem>>, vector<1x8xf32>
      %cst_32 = arith.constant dense<0xFF800000> : vector<8xf32>
      %58 = vector.multi_reduction <maximumf>, %32, %cst_32 [0] : vector<8x8xf32> to vector<8xf32>
      %59 = vector.shape_cast %58 : vector<8xf32> to vector<1x8xf32>
      %60 = arith.maximumf %57, %59 : vector<1x8xf32>
      %c0_33 = arith.constant 0 : index
      %c0_34 = arith.constant 0 : index
      %61 = vector.load %arg13[%c0_33, %c0_34] : memref<1x8xf32, #tpu.memory_space<vmem>>, vector<1x8xf32>
      %62 = arith.subf %57, %60 : vector<1x8xf32>
      %63 = math.exp %62 : vector<1x8xf32>
      %64 = arith.mulf %61, %63 : vector<1x8xf32>
      %65 = vector.broadcast %60 : vector<1x8xf32> to vector<8x8xf32>
      %66 = arith.subf %32, %65 : vector<8x8xf32>
      %67 = math.exp %66 : vector<8x8xf32>
      %cst_35 = arith.constant dense<0.000000e+00> : vector<8xf32>
      %68 = vector.multi_reduction <add>, %67, %cst_35 [0] : vector<8x8xf32> to vector<8xf32>
      %69 = vector.shape_cast %68 : vector<8xf32> to vector<1x8xf32>
      %70 = arith.addf %64, %69 : vector<1x8xf32>
      %c0_36 = arith.constant 0 : index
      %c0_37 = arith.constant 0 : index
      %71 = vector.load %arg13[%c0_36, %c0_37] : memref<1x8xf32, #tpu.memory_space<vmem>>, vector<1x8xf32>
      tpu.vector_store %arg13[%c0_36, %c0_37], %70 {strides = array<i32>} : memref<1x8xf32, #tpu.memory_space<vmem>>, vector<1x8xf32>,
      %c0_38 = arith.constant 0 : index
      %c0_39 = arith.constant 0 : index
      %72 = vector.load %arg14[%c0_38, %c0_39] : memref<1x8xf32, #tpu.memory_space<vmem>>, vector<1x8xf32>
      %cst_40 = arith.constant dense<0.000000e+00> : vector<8xf32>
      %73 = vector.multi_reduction <add>, %56, %cst_40 [0] : vector<8x8xf32> to vector<8xf32>
      %74 = vector.shape_cast %73 : vector<8xf32> to vector<1x8xf32>
      %75 = arith.addf %72, %74 : vector<1x8xf32>
      %c0_41 = arith.constant 0 : index
      %c0_42 = arith.constant 0 : index
      %76 = vector.load %arg14[%c0_41, %c0_42] : memref<1x8xf32, #tpu.memory_space<vmem>>, vector<1x8xf32>
      tpu.vector_store %arg14[%c0_41, %c0_42], %75 {strides = array<i32>} : memref<1x8xf32, #tpu.memory_space<vmem>>, vector<1x8xf32>,
      %c0_43 = arith.constant 0 : index
      %c0_44 = arith.constant 0 : index
      %77 = vector.load %arg12[%c0_43, %c0_44] : memref<1x8xf32, #tpu.memory_space<vmem>>, vector<1x8xf32>
      tpu.vector_store %arg12[%c0_43, %c0_44], %60 {strides = array<i32>} : memref<1x8xf32, #tpu.memory_space<vmem>>, vector<1x8xf32>,
    } else {
    }
    %c0_i32_27 = arith.constant 0 : i32
    %52 = arith.cmpi eq, %arg1, %c0_i32_27 : i32
    %53 = arith.extui %52 : i1 to i32
    %c0_i32_28 = arith.constant 0 : i32
    %54 = arith.cmpi ne, %53, %c0_i32_28 : i32
    scf.if %54 {
      %c0_29 = arith.constant 0 : index
      %c0_30 = arith.constant 0 : index
      %55 = vector.load %arg10[%c0_29, %c0_30] : memref<1x8xf32, #tpu.memory_space<vmem>>, vector<1x8xf32>
      %c0_31 = arith.constant 0 : index
      %c0_32 = arith.constant 0 : index
      %56 = vector.load %arg12[%c0_31, %c0_32] : memref<1x8xf32, #tpu.memory_space<vmem>>, vector<1x8xf32>
      %c0_33 = arith.constant 0 : index
      %c0_34 = arith.constant 0 : index
      %57 = vector.load %arg13[%c0_33, %c0_34] : memref<1x8xf32, #tpu.memory_space<vmem>>, vector<1x8xf32>
      %58 = math.log %57 : vector<1x8xf32>
      %59 = arith.addf %56, %58 : vector<1x8xf32>
      %c0_35 = arith.constant 0 : index
      %c0_36 = arith.constant 0 : index
      %60 = vector.load %arg14[%c0_35, %c0_36] : memref<1x8xf32, #tpu.memory_space<vmem>>, vector<1x8xf32>
      %61 = arith.mulf %55, %59 : vector<1x8xf32>
      %62 = arith.subf %60, %61 : vector<1x8xf32>
      %cst_37 = arith.constant -1.000000e+00 : f32
      %63 = vector.broadcast %cst_37 : f32 to vector<1x8xf32>
      %64 = arith.mulf %63, %62 : vector<1x8xf32>
      %65 = arith.divf %64, %55 : vector<1x8xf32>
      %c0_38 = arith.constant 0 : index
      %c0_39 = arith.constant 0 : index
      %66 = vector.load %arg11[%c0_38, %c0_39] : memref<1x8xf32, #tpu.memory_space<vmem>>, vector<1x8xf32>
      tpu.vector_store %arg11[%c0_38, %c0_39], %65 {strides = array<i32>} : memref<1x8xf32, #tpu.memory_space<vmem>>, vector<1x8xf32>,
    } else {
    }
    return
  }
  func.func @transform_0(%arg0: i32, %arg1: i32) -> (i32, i32) {
    %c0_i32 = arith.constant 0 : i32
    %c0_i32_0 = arith.constant 0 : i32
    return %c0_i32, %arg0 : i32, i32
  }
  func.func @transform_1(%arg0: i32, %arg1: i32) -> (i32, i32) {
    %c0_i32 = arith.constant 0 : i32
    %c0_i32_0 = arith.constant 0 : i32
    return %arg1, %c0_i32 : i32, i32
  }
  func.func @transform_2(%arg0: i32, %arg1: i32) -> (i32, i32) {
    %c0_i32 = arith.constant 0 : i32
    %c0_i32_0 = arith.constant 0 : i32
    return %c0_i32, %arg0 : i32, i32
  }
  func.func @transform_3(%arg0: i32, %arg1: i32) -> (i32, i32) {
    %c0_i32 = arith.constant 0 : i32
    %c0_i32_0 = arith.constant 0 : i32
    return %arg1, %c0_i32 : i32, i32
  }
  func.func @transform_4(%arg0: i32, %arg1: i32) -> (i32, i32) {
    %c0_i32 = arith.constant 0 : i32
    %c0_i32_0 = arith.constant 0 : i32
    return %c0_i32, %arg0 : i32, i32
  }
  func.func @transform_5(%arg0: i32, %arg1: i32) -> (i32, i32) {
    %c0_i32 = arith.constant 0 : i32
    %c0_i32_0 = arith.constant 0 : i32
    return %arg1, %c0_i32 : i32, i32
  }
  func.func @transform_6(%arg0: i32, %arg1: i32) -> (i32, i32) {
    %c0_i32 = arith.constant 0 : i32
    %c0_i32_0 = arith.constant 0 : i32
    return %c0_i32, %arg0 : i32, i32
  }
  func.func @transform_7(%arg0: i32, %arg1: i32) -> (i32, i32) {
    %c0_i32 = arith.constant 0 : i32
    %c0_i32_0 = arith.constant 0 : i32
    return %arg1, %c0_i32 : i32, i32
  }
  func.func @transform_8(%arg0: i32, %arg1: i32) -> (i32, i32) {
    %c0_i32 = arith.constant 0 : i32
    %c0_i32_0 = arith.constant 0 : i32
    return %c0_i32, %arg0 : i32, i32
  }
  func.func @transform_9(%arg0: i32, %arg1: i32) -> (i32, i32) {
    %c0_i32 = arith.constant 0 : i32
    %c0_i32_0 = arith.constant 0 : i32
    return %c0_i32, %arg0 : i32, i32
  }
}

</mosaic_0001>

<bundles_post_ra>
// kernel: tpu_custom_call.1
= control target key start
LH: loop header
LB: loop body
LE: loop exit
PB: predicated region body
PF: predicated region fallthrough
CT: control target
= control target key end

     0   :  { %vm37_vm0 = vcmask 57344   ;;  %v398_v3 = vmov 0.0|0.0   ;;  %v399_v6 = vmov 0.0   ;;  %vm400_vm1 = vmmov 0   ;;  %s513_s0 = inlined_call_operand.vmem [shape: f32[32,8], index: 0, kind: input, shape index: {}]   ;;  %s514_s1 = inlined_call_operand.vmem [shape: f32[8,32], index: 1, kind: input, shape index: {}]   ;;  %s515_s2 = inlined_call_operand.vmem [shape: f32[1,8], index: 2, kind: input, shape index: {}]   ;;  %s516_s3 = inlined_call_operand.vmem [shape: f32[8,1], index: 3, kind: input, shape index: {}]   ;;  %s517_s4 = inlined_call_operand.vmem [shape: f32[1,8], index: 4, kind: input, shape index: {}]   ;;  %s518_s5 = inlined_call_operand.vmem [shape: f32[8,1], index: 5, kind: input, shape index: {}]   ;;  %s519_s6 = inlined_call_operand.vmem [shape: s32[1,8], index: 6, kind: input, shape index: {}]   ;;  %s520_s7 = inlined_call_operand.vmem [shape: s32[8,1], index: 7, kind: input, shape index: {}]   ;;  %s521_s8 = inlined_call_operand.vmem [shape: f32[1,8], index: 8, kind: input, shape index: {}]   ;;  %s522_s9 = inlined_call_operand.hbm [shape: f32[1,8], index: 9, kind: output, shape index: {}]  }
   0x1   :  { %v41_v0 = vld [vmem:[%s513_s0] sm:$0xff]  ;;  %v42_v1 = vld [vmem:[%s513_s0 + $0x8] sm:$0xff]  ;;  %v43_v2 = vld [vmem:[%s513_s0 + $0x10] sm:$0xff]  ;;  %347 = vmatprep.subr.bf16.mxu0 %v398_v3  ;;  %39 = vst.msk [vmem:[#allocation3] sm:$0x1] %vm37_vm0, %v399_v6  ;;  %344 = vmatprep.mubr.msk.f32.mxu0 %vm400_vm1, %v399_v6  ;;  %v401_v8 = vmov 0  }
   0x2   :  { %v348_v4 = vpack.c.bf16 %v42_v1, %v41_v0  ;;  %v44_v5 = vld [vmem:[%s513_s0 + $0x18] sm:$0xff]  ;;  %40 = vst.msk [vmem:[#allocation4] sm:$0x1] %vm37_vm0, %v399_v6  ;;  %v47_v7 = vld [vmem:[%s516_s3] sm:$0xff]  ;;  %360 = vset.pattern.permute.xlu0 %v401_v8 }
   0x3   :  { %v167_v9 = vld [vmem:[%s520_s7] sm:$0xff] }
   0x4   :  { %14 = vsyncpa [#allocation6], 0  ;;  %349 = vmatpush3.bf16.msra.mxu0 %v348_v4  ;;  %v351_v10 = vpack.c.bf16 %v44_v5, %v43_v2  ;;  %127 = vperm.xlu0 %360, %v47_v7   ;;  %v49_v11 = vld [vmem:[%s518_s5] sm:$0xff]  ;;  %vm50_vm2 = vcmask 261120   ;;  %v402_v13 = vmov -1e+30   ;;  %v189_v35 = vlaneseq }
   0x5   :  { %350 = vmatprep.subr.bf16.mxu0 %v398_v3  ;;  %361 = vset.pattern.permute.xlu1 %v401_v8  ;;  %v45_v12 = vld [vmem:[%s514_s1] sm:$0xff]  ;;  %38 = vst.msk [vmem:[#allocation2] sm:$0x1] %vm37_vm0, %v402_v13  ;;  %vm403_vm6 = vmmov 1   ;;  %vm203_vm10 = vcmask 64512   ;;  %s404_s25 = smov [#allocation5]  }
   0x6   :  { %170 = vperm.xlu1 %361, %v167_v9   ;;  %v328_v18 = vld [vmem:[%s515_s2] ss:$0 sm:$0xff]  ;;  %v190_v36 = vshrl.u32 %v189_v35, 7  ;;  %v194_v37 = vand.u32 127, %v189_v35  ;;  %s319_s26 = sshll.u32 %s404_s25, 4  ;;  %s320_s26 = int_to_ptr.vmem [resolvable:$true] %s319_s26 }
   0x7   :  { %v329_v22 = vld [vmem:[%s517_s4] ss:$0 sm:$0xff]  ;;  %s374_s27 = scalar_lea.vmem %s320_s26, 16  ;;  %s378_s28 = scalar_lea.vmem %s320_s26, 32 }
   0x8   :  { %352 = vmatpush3.bf16.msra.mxu0 %v351_v10  ;;  %141 = vperm.xlu0 %360, %v49_v11   ;;  %v330_v38 = vld [vmem:[%s519_s6] ss:$0 sm:$0xff]  ;;  %vm197_vm5 = vcmp.eq.s32.totalorder %v190_v36, %v194_v37  ;;  %v220_v60 = vsub.s32 0, %v190_v36  ;;  %v212_v13 = vld [vmem:[#allocation3] sm:$0x1]  ;;  %p375_p0 = scmp.ne.s32.totalorder %s320_s26, %s374_s27  ;;  %p379_p1 = scmp.lt.s32.totalorder %s320_s26, %s320_s26 }
   0x9   :  { %vm199_vm7 = vmxor %vm197_vm5, %vm403_vm6  ;;  %v236_v59 = vld [vmem:[#allocation4] sm:$0x1]  ;;  %p380_p2 = scmp.lt.s32.totalorder %s378_s28, %s374_s27 }
   0xb   :  { %345 = vmatmul.mubr.msk.f32.vlgmr.msra.gmra.mrb[0].mxu0 %vm50_vm2, %v45_v12  ;;  %p381_p3 = por %p380_p2, %p379_p1 }
   0xc   :  { %v202_v58 = vld [vmem:[#allocation2] sm:$0x1] }
   0xd   :  { %p382_p4 = pnand %p381_p3, %p375_p0 }
  0x83   :  { %v128_v17 = vpop.permute.xlu0 %127 }
  0x85   :  { %v171_v39 = vpop.permute.xlu1 %170 }
  0x86   :  { %vm176_vm8 = vcmp.eq.s32.totalorder %v171_v39, %v330_v38 }
  0x87   :  { %v142_v23 = vpop.permute.xlu0 %141  ;;  %vm200_vm9 = vmand %vm176_vm8, %vm199_vm7 }
  0xde   :  { %v120_v14 = vpop.f32.mrb[0].mxu0 }
  0xdf   :  { %v124_v15 = vmul.f32 2.0, %v120_v14  ;;  %v346_v16 = vpop.f32.mrb[1].mxu0 }
  0xe1   :  { %v130_v19 = vsub.f32 %v128_v17, %v124_v15 }
  0xe3   :  { %v137_v20 = vadd.f32 %v328_v18, %v130_v19  ;;  %v299_v19 = vld [vmem:[%s521_s8] sm:$0x1] }
  0xe5   :  { %v138_v21 = vmax.f32 %v137_v20, 1e-07 }
  0xe7   :  { %v144_v24 = vmul.f32 %v142_v23, %v138_v21 }
  0xe9   :  { %v151_v25 = vmul.f32 %v329_v22, %v144_v24 }
  0xeb   :  { %v153_v26 = vadd.f32 2.0, %v151_v25  ;;  %v152_v31 = vadd.f32 1.0, %v151_v25 }
  0xed   :  { %v154_v27 = vmul.f32 %v153_v26, %v151_v25 }
  0xef   :  { %362 = vrsqrt.f32 %v154_v27  ;;  %vm157_vm3 = vcmp.eq.f32.partialorder %v154_v27, inf  ;;  %v160_v30 = vand.u32 2147483648, %v154_v27  ;;  %vm159_vm4 = vcmp.eq.f32.partialorder %v154_v27, 0.0 }
  0xf9   :  { %v363_v28 = vpop.eup %362 }
  0xfa   :  { %v156_v29 = vmul.f32 %v363_v28, %v154_v27 }
  0xfc   :  { %v158_v32 = vsel %vm157_vm3, %v154_v27, %v156_v29 }
  0xfd   :  { %v161_v33 = vsel %vm159_vm4, %v160_v30, %v158_v32 }
  0xfe   :  { %v162_v34 = vadd.f32 %v161_v33, %v152_v31 }
 0x100   :  { %364 = vlog2.f32 %v162_v34 }
 0x10a   :  { %v365_v40 = vpop.eup %364 }
 0x10b   :  { %v164_v41 = vmul.f32 0.6931472, %v365_v40 }
 0x10d   :  { %v165_v42 = vmul.f32 %v164_v41, %v164_v41 }
 0x10f   :  { %v166_v43 = vmul.f32 -10.0, %v165_v42 }
 0x111   :  { %v198_v44 = vsel %vm197_vm5, -1e+30, %v166_v43  ;;  %v201_v45 = vsel %vm200_vm9, %v166_v43, 0.0 }
 0x112   :  { %v204_v46 = vsel %vm203_vm10, %v198_v44, -inf  ;;  %v237_v47 = vsel %vm203_vm10, %v201_v45, 0.0 }
 0x113   :  { %v205_v48 = vrot.slane %v204_v46, 4  ;;  %v238_v49 = vrot.slane %v237_v47, 4 }
 0x115   :  { %v206_v50 = vmax.f32 %v204_v46, %v205_v48  ;;  %v239_v51 = vadd.f32 %v238_v49, %v237_v47 }
 0x117   :  { %v207_v52 = vrot.slane %v206_v50, 2  ;;  %v240_v53 = vrot.slane %v239_v51, 2 }
 0x119   :  { %v208_v54 = vmax.f32 %v206_v50, %v207_v52  ;;  %v241_v55 = vadd.f32 %v240_v53, %v239_v51 }
 0x11b   :  { %v209_v56 = vrot.slane %v208_v54, 1  ;;  %v242_v57 = vrot.slane %v241_v55, 1 }
 0x11d   :  { %v210_v61 = vmax.f32 %v208_v54, %v209_v56  ;;  %v243_v62 = vadd.f32 %v242_v57, %v241_v55 }
 0x11f   :  { %v211_v63 = vmax.f32 %v202_v58, %v210_v61  ;;  %v244_v0 = vadd.f32 %v243_v62, %v236_v59 }
 0x121   :  { %v221_v1 = vrot.slane %v211_v63, %v220_v60  ;;  %245 = vst.msk [vmem:[#allocation4] sm:$0x1] %vm37_vm0, %v244_v0  ;;  %246 = vst.msk [vmem:[#allocation2] sm:$0x1] %vm37_vm0, %v211_v63  ;;  %v213_v4 = vsub.f32 %v202_v58, %v211_v63 }
 0x123   :  { %v223_v2 = vsub.f32 %v198_v44, %v221_v1  ;;  %v214_v5 = vmul.f32 1.442695, %v213_v4 }
 0x125   :  { %v224_v3 = vmul.f32 1.442695, %v223_v2 }
 0x127   :  { %366 = vpow2.f32 %v224_v3 }
 0x128   :  { %368 = vpow2.f32 %v214_v5  ;;  %v300_v22 = vld [vmem:[#allocation2] sm:$0x1]  ;;  %v305_v25 = vld [vmem:[#allocation4] sm:$0x1] }
 0x131   :  { %v367_v6 = vpop.eup %366 }
 0x132   :  { %v226_v7 = vsel %vm203_vm10, %v367_v6, 0.0  ;;  %v369_v12 = vpop.eup %368 }
 0x133   :  { %v227_v8 = vrot.slane %v226_v7, 4  ;;  %v216_v15 = vmul.f32 %v369_v12, %v212_v13 }
 0x135   :  { %v228_v9 = vadd.f32 %v227_v8, %v226_v7 }
 0x137   :  { %v229_v10 = vrot.slane %v228_v9, 2 }
 0x139   :  { %v230_v11 = vadd.f32 %v229_v10, %v228_v9 }
 0x13b   :  { %v231_v14 = vrot.slane %v230_v11, 1 }
 0x13d   :  { %v232_v16 = vadd.f32 %v231_v14, %v230_v11 }
 0x13f   :  { %v233_v17 = vadd.f32 %v232_v16, %v216_v15 }
 0x141   :  { %235 = vst.msk [vmem:[#allocation3] sm:$0x1] %vm37_vm0, %v233_v17 }
 0x148   :  { %v301_v18 = vld [vmem:[#allocation3] sm:$0x1] }
 0x149   :  { %370 = vlog2.f32 %v301_v18 }
 0x14a   :  { %372 = vrcp.f32 %v299_v19 }
 0x153   :  { %v371_v20 = vpop.eup %370 }
 0x154   :  { %v303_v21 = vmul.f32 0.6931472, %v371_v20  ;;  %v373_v27 = vpop.eup %372 }
 0x156   :  { %v304_v23 = vadd.f32 %v303_v21, %v300_v22 }
 0x158   :  { %v306_v24 = vmul.f32 %v304_v23, %v299_v19 }
 0x15a   :  { %v307_v26 = vsub.f32 %v305_v25, %v306_v24 }
 0x15c   :  { %v308_v28 = vmul.f32 -1.0, %v307_v26 }
 0x15e   :  { %v310_v29 = vmul.f32 %v373_v27, %v308_v28 }
 0x160   :  { %312 = vst.msk [vmem:[#allocation5] sm:$0x1] %vm37_vm0, %v310_v29 }
 0x161   :  { %385 = shalt.err (!%p382_p4)
}
 0x162   :  { %s386_s30 = scalar_lea.hbm %s522_s9, 16 }
 0x163   :  { %p387_p5 = scmp.ne.s32.totalorder %s522_s9, %s386_s30  ;;  %p390_p6 = scmp.lt.u32.totalorder %s386_s30, %s522_s9 }
 0x165   :  { %p392_p7 = pnand %p390_p6, %p387_p5 }
 0x167   :  { %395 = shalt.err (!%p392_p7)
}
 0x168   :  { %322 = dma.vmem_to_hbm [thread:$0]  %s320_s26, 16, %s522_s9, [#allocation6]  }
 0x169   :  { %396 = dma.done.wait [#allocation6], 16  }
 0x16a   :  { %397 = vsyncadd [#allocation6], 4294967280 }
 0x16b   :  { %326 = vsyncpa [#allocation6], 1 }

</bundles_post_ra>
